<compile_context>
chip_gen: v7x
topology: tpu7x:2x2x1
jax: 0.10.0
libtpu: 0.0.40
codegen_flags: <defaults>
</compile_context>

<pallas_src>
import functools
import math

import jax
import jax.numpy as jnp
from jax.experimental import pallas as pl
from jax.experimental.pallas import tpu as pltpu


def _peft_linear_kernel(x_ref, xa_ref, b_ref, w_ref, bias_ref, o_ref, acc_ref):
    """One (M, N) output tile; K (in_features) is the innermost reduction axis.

    acc_ref : [tm, tn] f32 running sum_k x_k @ w_k.
    Last K step:  o = acc + (xa @ b) + bias, where xa = x @ a_eff was
    precomputed in the wrapper (low-rank path hoisted out of the N/K loops).
    """
    k = pl.program_id(2)

    @pl.when(k == 0)
    def _init():
        acc_ref[...] = jnp.zeros_like(acc_ref)

    # Frozen full-rank path: accumulate partial x @ w on the MXU.
    acc_ref[...] += jnp.dot(x_ref[...], w_ref[...],
                            preferred_element_type=jnp.float32)

    @pl.when(k == pl.num_programs(2) - 1)
    def _finalize():
        low_rank = jnp.dot(xa_ref[...].astype(jnp.float32),
                           b_ref[...].astype(jnp.float32),
                           preferred_element_type=jnp.float32)
        out = acc_ref[...] + low_rank + bias_ref[...].astype(jnp.float32)
        o_ref[...] = out.astype(o_ref.dtype)


def _device_tile_defaults():
    """Per-generation (tm, tn, tk, vmem_cap_bytes) defaults."""
    try:
        kind = jax.devices()[0].device_kind.lower()
    except Exception:  # pragma: no cover - defensive
        kind = ""
    if "v6" in kind:
        return 1024, 2048, 512, 96 << 20
    if "v7" in kind:
        # Only 64 MiB VMEM per TC; megacore 'parallel' sharding does the rest.
        return 512, 1024, 512, 56 << 20
    if "v5" in kind:
        return 512, 1024, 1024, 96 << 20
    return 512, 1024, 512, 56 << 20


def _pick_mn_tile(dim, pref):
    # M / N tolerate a ragged final block (output stores are masked by Pallas).
    return dim if dim <= pref else pref


def _resolve_k(in_features, pref):
    """Return (tk, padded_K).  Prefer an exact 128-multiple divisor; otherwise
    zero-pad K (exact, since padded x columns are zero)."""
    if in_features <= pref:
        return in_features, in_features
    cand = (pref // 128) * 128
    while cand >= 128:
        if in_features % cand == 0:
            return cand, in_features
        cand -= 128
    tk = max((pref // 128) * 128, 128)
    k_pad = pl.cdiv(in_features, tk) * tk
    return tk, k_pad


@functools.partial(
    jax.jit,
    static_argnames=("use_scale", "compute_dtype", "tm", "tn", "tk"))
def peft_linear_forward(x, a, b, w, bias=None, alpha=32.0, *,
                        use_scale=False, compute_dtype=jnp.bfloat16,
                        tm=None, tn=None, tk=None):
    """PeftLinear.forward equivalent (unmerged, non-debug path).

    Args:
        x: [*, in_features]
        a: [in_features, rank]          (trainable low-rank factor)
        b: [rank, out_features]         (trainable low-rank factor)
        w: [in_features, out_features]  (frozen weight)
        bias: optional [out_features]
        alpha: scale numerator (only used when use_scale=True)
        use_scale: STATIC flag (matches the module's self.use_scale)
        compute_dtype: STATIC matmul-operand dtype (default bf16 for MXU
            throughput; pass None to keep the input dtype).  Accumulation is
            always float32.
        tm/tn/tk: STATIC tile overrides; default = per-generation choice.
    Returns:
        y: [*, out_features] in x.dtype.
    """
    in_features, rank = a.shape
    out_features = b.shape[1]
    assert w.shape == (in_features, out_features)
    assert x.shape[-1] == in_features

    tm0, tn0, tk0, vmem_cap = _device_tile_defaults()
    tm = tm0 if tm is None else tm
    tn = tn0 if tn is None else tn
    tk = tk0 if tk is None else tk

    # `use_scale` is static -> resolved at trace time.
    a_eff = a * (alpha / rank) if use_scale else a

    # Bias fused into the kernel epilogue (zeros when absent).
    if bias is None:
        bias2 = jnp.zeros((1, out_features), dtype=jnp.float32)
    else:
        bias2 = bias.reshape(1, out_features).astype(jnp.float32)

    # Optional (default) bf16 operands; f32 accumulation kept in-kernel.
    if compute_dtype is not None:
        xc = x.astype(compute_dtype)
        a_eff = a_eff.astype(compute_dtype)
        bc = b.astype(compute_dtype)
        wc = w.astype(compute_dtype)
    else:
        xc, bc, wc = x, b, w

    lead_shape = x.shape[:-1]
    m = math.prod(lead_shape) if lead_shape else 1
    x2 = xc.reshape(m, in_features)

    # Low-rank path hoisted out of the kernel's N/K loops: xa = x @ a_eff,
    # computed once with XLA (f32 accumulation), consumed in the epilogue.
    xa = jnp.dot(x2, a_eff, preferred_element_type=jnp.float32)

    # Tile / padding selection.
    tm_ = _pick_mn_tile(m, tm)
    tn_ = _pick_mn_tile(out_features, tn)
    tk_, k_pad = _resolve_k(in_features, tk)
    if k_pad > in_features:
        # Zero-pad K once; padded x columns are zero so x@w is unchanged.
        x2 = jnp.pad(x2, ((0, 0), (0, k_pad - in_features)))
        wc = jnp.pad(wc, ((0, k_pad - in_features), (0, 0)))

    n_i = pl.cdiv(m, tm_)
    n_j = pl.cdiv(out_features, tn_)
    n_k = k_pad // tk_
    grid = (n_i, n_j, n_k)

    # VMEM budget: double-buffered inputs/outputs + the f32 accumulator.
    op_item = jnp.dtype(x2.dtype).itemsize
    out_item = jnp.dtype(x.dtype).itemsize
    vmem_est = (2 * tm_ * tk_ * op_item            # x (2 bufs)
                + 2 * tk_ * tn_ * op_item          # w (2 bufs)
                + 2 * tm_ * tn_ * out_item         # out (2 bufs)
                + tm_ * tn_ * 4                    # f32 accumulator scratch
                + 2 * tm_ * rank * 4               # xa (2 bufs)
                + 2 * rank * tn_ * op_item         # b (2 bufs)
                + 2 * tn_ * 4)                     # bias (2 bufs)
    vmem_limit = int(min(vmem_cap, max(32 << 20, int(vmem_est * 1.5))))

    # Advisory cost estimate: count real HBM traffic under this grid order
    # (x re-read once per N tile, w re-read once per M tile).
    flops = (2 * m * k_pad * out_features
             + 2 * m * in_features * rank
             + 2 * m * rank * out_features)
    in_bytes = (x2.size * x2.dtype.itemsize * n_j
                + wc.size * wc.dtype.itemsize * n_i
                + xa.size * xa.dtype.itemsize * n_j
                + bc.size * bc.dtype.itemsize * n_i
                + bias2.size * bias2.dtype.itemsize * n_i)
    out_bytes = m * out_features * out_item
    cost = pl.CostEstimate(flops=flops, transcendentals=0,
                           bytes_accessed=in_bytes + out_bytes)

    y2 = pl.pallas_call(
        _peft_linear_kernel,
        out_shape=jax.ShapeDtypeStruct((m, out_features), x.dtype),
        grid_spec=pltpu.PrefetchScalarGridSpec(
            num_scalar_prefetch=0,
            grid=grid,
            in_specs=[
                pl.BlockSpec((tm_, tk_), lambda i, j, k: (i, k)),     # x tile
                pl.BlockSpec((tm_, rank), lambda i, j, k: (i, 0)),    # xa (epilogue)
                pl.BlockSpec((rank, tn_), lambda i, j, k: (0, j)),    # b (epilogue)
                pl.BlockSpec((tk_, tn_), lambda i, j, k: (k, j)),     # w (K,N-tiled)
                pl.BlockSpec((1, tn_), lambda i, j, k: (0, j)),       # bias (fused)
            ],
            out_specs=pl.BlockSpec((tm_, tn_), lambda i, j, k: (i, j)),
            scratch_shapes=[
                pltpu.VMEM((tm_, tn_), jnp.float32),   # x @ w accumulator
            ],
        ),
        compiler_params=pltpu.CompilerParams(
            dimension_semantics=("parallel", "parallel", "arbitrary"),
            vmem_limit_bytes=vmem_limit),
        cost_estimate=cost,
    )(x2, xa, bc, wc, bias2)

    return y2.reshape(*lead_shape, out_features)


if __name__ == "__main__":
    # Module configuration (small, consistent with PeftLinear.__init__):
    in_features = 32
    out_features = 32
    rank = 4                 # integer rank
    alpha = 32.0             # default

    key = jax.random.PRNGKey(0)
    k_a, k_b, k_w, k_x, k_bias = jax.random.split(key, 5)

    # init_method='random' so the low-rank path is exercised.
    a = jax.random.normal(k_a, (in_features, rank), dtype=jnp.float32)
    b = jax.random.normal(k_b, (rank, out_features), dtype=jnp.float32)
    w = jax.random.normal(k_w, (in_features, out_features), dtype=jnp.float32)
    bias = jax.random.normal(k_bias, (out_features,), dtype=jnp.float32)

    # Input: [batch=2, seq=8, in_features=32]
    x = jax.random.normal(k_x, (2, 8, in_features), dtype=jnp.float32)

    # --- exact f32 path, no bias, no scale (module defaults) ---
    y = peft_linear_forward(x, a, b, w, bias=None, use_scale=False,
                            compute_dtype=None)
    y = jax.block_until_ready(y)
    y_ref = x @ a @ b + x @ w
    assert y.shape == (2, 8, out_features)
    assert jnp.allclose(y, y_ref, atol=1e-4, rtol=1e-4), "f32 mismatch vs reference"

    # --- default bf16-compute path with scale + bias (perf configuration) ---
    y2 = peft_linear_forward(x, a, b, w, bias=bias, alpha=alpha,
                             use_scale=True)
    y2 = jax.block_until_ready(y2)
    a_eff_ref = (alpha / rank) * a
    y2_ref = x @ a_eff_ref @ b + x @ w + bias.reshape(-1)
    rel_err = jnp.linalg.norm(y2 - y2_ref) / jnp.linalg.norm(y2_ref)
    assert y2.shape == (2, 8, out_features)
    assert float(rel_err) < 2e-2, f"bf16 relative error too large: {rel_err}"

    print("KERNEL_OK")
</pallas_src>

<mosaic_0001>
module attributes {stable_mosaic.version = 11 : i64} {
  func.func @_peft_linear_kernel(%arg0: i32, %arg1: i32, %arg2: i32, %arg3: memref<16x32xf32, #tpu.memory_space<vmem>>, %arg4: memref<16x4xf32, #tpu.memory_space<vmem>>, %arg5: memref<4x32xf32, #tpu.memory_space<vmem>>, %arg6: memref<32x32xf32, #tpu.memory_space<vmem>>, %arg7: memref<1x32xf32, #tpu.memory_space<vmem>>, %arg8: memref<16x32xf32, #tpu.memory_space<vmem>>, %arg9: memref<16x32xf32, #tpu.memory_space<vmem>>) attributes {dimension_semantics = [#tpu.dimension_semantics<parallel>, #tpu.dimension_semantics<parallel>, #tpu.dimension_semantics<arbitrary>], iteration_bounds = array<i64: 1, 1, 1>, scalar_prefetch = 0 : i64, scratch_operands = 1 : i64, tpu.core_type = #tpu.core_type<tc>, window_params = [{transform_indices = @transform_0, window_bounds = array<i64: 16, 32>}, {transform_indices = @transform_1, window_bounds = array<i64: 16, 4>}, {transform_indices = @transform_2, window_bounds = array<i64: 4, 32>}, {transform_indices = @transform_3, window_bounds = array<i64: 32, 32>}, {transform_indices = @transform_4, window_bounds = array<i64: 1, 32>}, {transform_indices = @transform_5, window_bounds = array<i64: 16, 32>}]} {
    %c0_i32 = arith.constant 0 : i32
    %0 = arith.cmpi eq, %arg2, %c0_i32 : i32
    %1 = arith.extui %0 : i1 to i32
    %c0_i32_0 = arith.constant 0 : i32
    %2 = arith.cmpi ne, %1, %c0_i32_0 : i32
    scf.if %2 {
      %cst_10 = arith.constant 0.000000e+00 : f32
      %12 = vector.broadcast %cst_10 : f32 to vector<16x32xf32>
      %c0_11 = arith.constant 0 : index
      %c0_12 = arith.constant 0 : index
      %13 = vector.load %arg9[%c0_11, %c0_12] : memref<16x32xf32, #tpu.memory_space<vmem>>, vector<16x32xf32>
      tpu.vector_store %arg9[%c0_11, %c0_12], %12 {strides = array<i32>} : memref<16x32xf32, #tpu.memory_space<vmem>>, vector<16x32xf32>,
    } else {
    }
    %c0 = arith.constant 0 : index
    %c0_1 = arith.constant 0 : index
    %3 = vector.load %arg9[%c0, %c0_1] : memref<16x32xf32, #tpu.memory_space<vmem>>, vector<16x32xf32>
    %c0_2 = arith.constant 0 : index
    %c0_3 = arith.constant 0 : index
    %4 = vector.load %arg3[%c0_2, %c0_3] : memref<16x32xf32, #tpu.memory_space<vmem>>, vector<16x32xf32>
    %c0_4 = arith.constant 0 : index
    %c0_5 = arith.constant 0 : index
    %5 = vector.load %arg6[%c0_4, %c0_5] : memref<32x32xf32, #tpu.memory_space<vmem>>, vector<32x32xf32>
    %cst = arith.constant dense<0.000000e+00> : vector<16x32xf32>
    %6 = tpu.matmul %4, %5, %cst {dimension_numbers = #tpu.dot_dimension_numbers<[1], [0], [0], [1], [0, 0, 1, 1], [], []>} : vector<16x32xf32>, vector<32x32xf32>, vector<16x32xf32> -> vector<16x32xf32>
    %7 = arith.addf %3, %6 : vector<16x32xf32>
    %c0_6 = arith.constant 0 : index
    %c0_7 = arith.constant 0 : index
    %8 = vector.load %arg9[%c0_6, %c0_7] : memref<16x32xf32, #tpu.memory_space<vmem>>, vector<16x32xf32>
    tpu.vector_store %arg9[%c0_6, %c0_7], %7 {strides = array<i32>} : memref<16x32xf32, #tpu.memory_space<vmem>>, vector<16x32xf32>,
    %c0_i32_8 = arith.constant 0 : i32
    %9 = arith.cmpi eq, %arg2, %c0_i32_8 : i32
    %10 = arith.extui %9 : i1 to i32
    %c0_i32_9 = arith.constant 0 : i32
    %11 = arith.cmpi ne, %10, %c0_i32_9 : i32
    scf.if %11 {
      %c0_10 = arith.constant 0 : index
      %c0_11 = arith.constant 0 : index
      %12 = vector.load %arg4[%c0_10, %c0_11] : memref<16x4xf32, #tpu.memory_space<vmem>>, vector<16x4xf32>
      %c0_12 = arith.constant 0 : index
      %c0_13 = arith.constant 0 : index
      %13 = vector.load %arg5[%c0_12, %c0_13] : memref<4x32xf32, #tpu.memory_space<vmem>>, vector<4x32xf32>
      %cst_14 = arith.constant dense<0.000000e+00> : vector<16x32xf32>
      %14 = tpu.matmul %12, %13, %cst_14 {dimension_numbers = #tpu.dot_dimension_numbers<[1], [0], [0], [1], [0, 0, 1, 1], [], []>} : vector<16x4xf32>, vector<4x32xf32>, vector<16x32xf32> -> vector<16x32xf32>
      %c0_15 = arith.constant 0 : index
      %c0_16 = arith.constant 0 : index
      %15 = vector.load %arg9[%c0_15, %c0_16] : memref<16x32xf32, #tpu.memory_space<vmem>>, vector<16x32xf32>
      %16 = arith.addf %15, %14 : vector<16x32xf32>
      %c0_17 = arith.constant 0 : index
      %c0_18 = arith.constant 0 : index
      %17 = vector.load %arg7[%c0_17, %c0_18] : memref<1x32xf32, #tpu.memory_space<vmem>>, vector<1x32xf32>
      %18 = vector.broadcast %17 : vector<1x32xf32> to vector<16x32xf32>
      %19 = arith.addf %16, %18 : vector<16x32xf32>
      %c0_19 = arith.constant 0 : index
      %c0_20 = arith.constant 0 : index
      %20 = vector.load %arg8[%c0_19, %c0_20] : memref<16x32xf32, #tpu.memory_space<vmem>>, vector<16x32xf32>
      tpu.vector_store %arg8[%c0_19, %c0_20], %19 {strides = array<i32>} : memref<16x32xf32, #tpu.memory_space<vmem>>, vector<16x32xf32>,
    } else {
    }
    return
  }
  func.func @transform_0(%arg0: i32, %arg1: i32, %arg2: i32) -> (i32, i32) {
    %c0_i32 = arith.constant 0 : i32
    return %arg0, %arg2 : i32, i32
  }
  func.func @transform_1(%arg0: i32, %arg1: i32, %arg2: i32) -> (i32, i32) {
    %c0_i32 = arith.constant 0 : i32
    %c0_i32_0 = arith.constant 0 : i32
    return %arg0, %c0_i32 : i32, i32
  }
  func.func @transform_2(%arg0: i32, %arg1: i32, %arg2: i32) -> (i32, i32) {
    %c0_i32 = arith.constant 0 : i32
    %c0_i32_0 = arith.constant 0 : i32
    return %c0_i32, %arg1 : i32, i32
  }
  func.func @transform_3(%arg0: i32, %arg1: i32, %arg2: i32) -> (i32, i32) {
    %c0_i32 = arith.constant 0 : i32
    return %arg2, %arg1 : i32, i32
  }
  func.func @transform_4(%arg0: i32, %arg1: i32, %arg2: i32) -> (i32, i32) {
    %c0_i32 = arith.constant 0 : i32
    %c0_i32_0 = arith.constant 0 : i32
    return %c0_i32, %arg1 : i32, i32
  }
  func.func @transform_5(%arg0: i32, %arg1: i32, %arg2: i32) -> (i32, i32) {
    %c0_i32 = arith.constant 0 : i32
    return %arg0, %arg1 : i32, i32
  }
}

</mosaic_0001>

<bundles_post_ra>
// kernel: peft_linear_forward.1
= control target key start
LH: loop header
LB: loop body
LE: loop exit
PB: predicated region body
PF: predicated region fallthrough
CT: control target
= control target key end

     0   :  { %10 = vsyncpa [#allocation4], 0  ;;  %s444_s0 = inlined_call_operand.vmem [shape: f32[16,32], index: 0, kind: input, shape index: {}]   ;;  %s445_s1 = inlined_call_operand.vmem [shape: f32[16,4], index: 1, kind: input, shape index: {}]   ;;  %s446_s2 = inlined_call_operand.hbm [shape: f32[4,32], index: 2, kind: input, shape index: {}]   ;;  %s447_s3 = inlined_call_operand.vmem [shape: f32[32,32], index: 3, kind: input, shape index: {}]   ;;  %s448_s4 = inlined_call_operand.vmem [shape: f32[1,32], index: 4, kind: input, shape index: {}]   ;;  %s449_s5 = inlined_call_operand.hbm [shape: f32[16,32], index: 5, kind: output, shape index: {}]  }
   0x1   :  { %11 = vsyncpa [#allocation5], 0  ;;  %s350_s18 = smov [#allocation3]   ;;  %s302_s22 = scalar_lea.hbm %s446_s2, 64 }
   0x2   :  { %s22_s19 = sshll.u32 %s350_s18, 4  ;;  %p303_p0 = scmp.ne.s32.totalorder %s446_s2, %s302_s22  ;;  %s23_s19 = int_to_ptr.vmem [resolvable:$true] %s22_s19 }
   0x3   :  { %p306_p1 = scmp.lt.u32.totalorder %s302_s22, %s446_s2 }
   0x5   :  { %p308_p2 = pnand %p306_p1, %p303_p0 }
   0x7   :  { %311 = shalt.err (!%p308_p2)
}
   0x8   :  { %s312_s27 = scalar_lea.vmem %s23_s19, 64  ;;  %p317_p4 = scmp.lt.s32.totalorder %s23_s19, %s23_s19 }
   0x9   :  { %p313_p3 = scmp.ne.s32.totalorder %s23_s19, %s312_s27  ;;  %p318_p5 = scmp.lt.s32.totalorder %s312_s27, %s312_s27 }
   0xb   :  { %p319_p6 = por %p318_p5, %p317_p4 }
   0xd   :  { %p320_p7 = pnand %p319_p6, %p313_p3 }
   0xf   :  { %323 = shalt.err (!%p320_p7)
}
  0x10   :  { %25 = dma.hbm_to_vmem [thread:$0]  %s446_s2, 64, %s23_s19, [#allocation4]  }
  0x11   :  { %346 = dma.done.wait [#allocation4], 64  }
  0x12   :  { %347 = vsyncadd [#allocation4], 4294967232  ;;  %vm37_vm0 = vcmask 261120   ;;  %v351_v0 = vmov 0.0   ;;  %v44_v1 = vld [vmem:[%s447_s3] sm:$0xff]  ;;  %v45_v2 = vld [vmem:[%s447_s3 + $0x8] sm:$0xff] }
  0x13   :  { %39 = vst.msk [vmem:[#allocation2 + $0x8] sm:$0xff] %vm37_vm0, %v351_v0  ;;  %38 = vst.msk [vmem:[#allocation2] sm:$0xff] %vm37_vm0, %v351_v0  ;;  %v46_v3 = vld [vmem:[%s447_s3 + $0x10] sm:$0xff]  ;;  %vm147_vm1 = vcmask 1043456   ;;  %v289_v4 = vpack.c.bf16 %v45_v2, %v44_v1  ;;  %v47_v5 = vld [vmem:[%s447_s3 + $0x18] sm:$0xff]  ;;  %vm140_vm2 = vcmask 31744  }
  0x14   :  { %v42_v6 = vld [vmem:[%s444_s0] sm:$0xff]  ;;  %v293_v7 = vpack.c.bf16 %v47_v5, %v46_v3  ;;  %v139_v8 = vld [vmem:[#allocation3] sm:$0xf]  ;;  %v138_v10 = vld [vmem:[%s445_s1 + $0x8] sm:$0xff] }
  0x15   :  { %281 = vmatprep.mubr.msk.f32.mxu0 %vm37_vm0, %v42_v6  ;;  %v137_v9 = vld [vmem:[%s445_s1] sm:$0xff]  ;;  %290 = vmatprep.subr.bf16.mxu0 %v289_v4  ;;  %v43_v11 = vld [vmem:[%s444_s0 + $0x8] sm:$0xff]  ;;  %s352_s0 = smov [#allocation6]  }
  0x16   :  { %284 = vmatprep.subr.msk.mxu1 %vm147_vm1, %v139_v8  ;;  %292 = vmatpush3.bf16.msra.mxu0 %v289_v4  ;;  %v263_v21 = vld [vmem:[%s448_s4] ss:$0 sm:$0xff]  ;;  %s246_s20 = sshll.u32 %s352_s0, 4  ;;  %s247_s20 = int_to_ptr.vmem [resolvable:$true] %s246_s20 }
  0x17   :  { %285 = vmatpush3.msk.msra.mxu1 %vm147_vm1, %v139_v8  ;;  %294 = vmatprep.subr.bf16.mxu0 %v293_v7  ;;  %s324_s21 = scalar_lea.vmem %s247_s20, 256  ;;  %p329_p9 = scmp.lt.s32.totalorder %s247_s20, %s247_s20 }
  0x18   :  { %286 = vmatprep.mubr.msk.f32.mxu1 %vm140_vm2, %v137_v9  ;;  %p325_p8 = scmp.ne.s32.totalorder %s247_s20, %s324_s21  ;;  %p330_p10 = scmp.lt.s32.totalorder %s324_s21, %s324_s21 }
  0x19   :  { %287 = vmatmul.mubr.msk.f32.vlgmr.msra.gmra.mrb[0].mxu1 %vm140_vm2, %v138_v10 }
  0x1a   :  { %296 = vmatpush3.bf16.msra.mxu0 %v293_v7  ;;  %v41_v14 = vld [vmem:[#allocation2 + $0x8] sm:$0xff]  ;;  %v40_v15 = vld [vmem:[#allocation2] sm:$0xff]  ;;  %p331_p11 = por %p330_p10, %p329_p9 }
  0x1c   :  { %p332_p12 = pnand %p331_p11, %p325_p8 }
  0x1d   :  { %282 = vmatmul.mubr.msk.f32.vlgmr.msra.gmra.mrb[0].mxu0 %vm37_vm0, %v43_v11 }
  0xec   :  { %v288_v12 = vpop.f32.mrb[0].mxu1 }
  0xed   :  { %v217_v13 = vpop.f32.mrb[1].mxu1 }
  0xf0   :  { %v283_v16 = vpop.f32.mrb[0].mxu0 }
  0xf1   :  { %v131_v17 = vadd.f32 %v283_v16, %v41_v14  ;;  %v121_v18 = vpop.f32.mrb[1].mxu0 }
  0xf2   :  { %v130_v19 = vadd.f32 %v121_v18, %v40_v15 }
  0xf3   :  { %133 = vst.msk [vmem:[#allocation2 + $0x8] sm:$0xff] %vm37_vm0, %v131_v17 }
  0xf4   :  { %132 = vst.msk [vmem:[#allocation2] sm:$0xff] %vm37_vm0, %v130_v19 }
  0xfa   :  { %v227_v20 = vld [vmem:[#allocation2 + $0x8] sm:$0xff] }
  0xfb   :  { %v229_v22 = vadd.f32 %v288_v12, %v227_v20  ;;  %v226_v23 = vld [vmem:[#allocation2] sm:$0xff] }
  0xfc   :  { %v228_v24 = vadd.f32 %v226_v23, %v217_v13 }
  0xfd   :  { %v238_v25 = vadd.f32 %v263_v21, %v229_v22 }
  0xfe   :  { %v237_v26 = vadd.f32 %v263_v21, %v228_v24 }
  0xff   :  { %240 = vst.msk [vmem:[#allocation6 + $0x8] sm:$0xff] %vm37_vm0, %v238_v25 }
 0x100   :  { %239 = vst.msk [vmem:[#allocation6] sm:$0xff] %vm37_vm0, %v237_v26 }
 0x101   :  { %335 = shalt.err (!%p332_p12)
}
 0x102   :  { %s336_s23 = scalar_lea.hbm %s449_s5, 256 }
 0x103   :  { %p337_p13 = scmp.ne.s32.totalorder %s449_s5, %s336_s23  ;;  %p340_p0 = scmp.lt.u32.totalorder %s336_s23, %s449_s5 }
 0x105   :  { %p342_p1 = pnand %p340_p0, %p337_p13 }
 0x107   :  { %345 = shalt.err (!%p342_p1)
}
 0x108   :  { %s353_s28 = smov 128   ;;  %s354_s29 = smov 8  }
 0x109   :  { %252 = dma.vmem_to_hbm [thread:$0]  %s247_s20, 256, %s449_s5, [#allocation5], %s353_s28, %s353_s28, %s354_s29  }
 0x10a   :  { %348 = dma.done.wait [#allocation5], 256  }
 0x10b   :  { %349 = vsyncadd [#allocation5], 4294967040 }
 0x10c   :  { %256 = vsyncpa [#allocation4], 1 }
 0x10d   :  { %257 = vsyncpa [#allocation5], 1 }

</bundles_post_ra>
